<compile_context>
chip_gen: v5e
topology: v5e:2x2
jax: 0.10.0
libtpu: 0.0.40
codegen_flags: <defaults>
</compile_context>

<pallas_src>
import numpy as np
import jax
import jax.numpy as jnp
from jax.experimental import pallas as pl
from jax.experimental.pallas import tpu as pltpu

EPS = 1e-5


def _round_up(x, m):
    return ((x + m - 1) // m) * m


def _cdiv(a, b):
    return (a + b - 1) // b


def _tiled_bytes(shape, itemsize):
    """VMEM footprint of a block: last two dims padded to (8, 128) tiling."""
    shape = tuple(int(s) for s in shape)
    if len(shape) == 1:
        lead, sub, lane = 1, 1, shape[0]
    else:
        lead = int(np.prod(shape[:-2], dtype=np.int64)) if len(shape) > 2 else 1
        sub, lane = shape[-2], shape[-1]
    return lead * _round_up(sub, 8) * _round_up(lane, 128) * int(itemsize)


# ----------------------------- Pallas kernel ------------------------------ #
def _encoder_kernel(x_ref,
                    w1_ref, t1_ref,
                    w2_ref, t2_ref,
                    w3_ref, t3_ref,
                    w4_ref, b4_ref,
                    o_ref):
    x = x_ref[0].astype(jnp.float32)                      # (tile_hw, Cin)

    # block1: 1x1 conv + folded BN(eval) + ReLU.
    if x_ref.shape[-1] == 1:
        # Cin == 1: the K=1 matmul is a rank-1 outer product -> do it on the
        # VPU as a broadcast multiply (w1_ref holds w1[0,:] * bn_scale, f32).
        h = jnp.maximum(x * w1_ref[...].astype(jnp.float32) + t1_ref[...], 0.0)
    else:
        h = jnp.dot(x.astype(w1_ref.dtype), w1_ref[...],
                    preferred_element_type=jnp.float32)
        h = jnp.maximum(h + t1_ref[...], 0.0)

    # block2 / block3: BN scale already folded into the weight columns.
    h = jnp.dot(h.astype(w2_ref.dtype), w2_ref[...],
                preferred_element_type=jnp.float32)
    h = jnp.maximum(h + t2_ref[...], 0.0)

    h = jnp.dot(h.astype(w3_ref.dtype), w3_ref[...],
                preferred_element_type=jnp.float32)
    h = jnp.maximum(h + t3_ref[...], 0.0)

    # final_conv (no BN / ReLU)
    h = jnp.dot(h.astype(w4_ref.dtype), w4_ref[...],
                preferred_element_type=jnp.float32)
    h = h + b4_ref[...]                                    # (tile_hw, Cout)

    # Fold the NHWC->NCHW permutation into the kernel: transpose on the XLU
    # (slack slot) and store a lane-dense (Cout, tile_hw) block.
    o_ref[0] = jnp.transpose(h).astype(o_ref.dtype)


# ------------------------------ JAX wrapper -------------------------------- #
def conv_encoder_forward(x_nchw, folded_params, *, tile_hw=1024,
                         out_dtype=jnp.float32):
    """x_nchw: (N, C_in, H, W) float32.  Returns (N, C_out * ceil(H/16) * ceil(W/16)).

    out_dtype: dtype of the kernel's HBM writeback.  The kernel is
    HBM-writeback bound, so out_dtype=jnp.bfloat16 is ~1.7-2x faster when the
    downstream consumer accepts it; accumulation stays f32 either way.
    """
    N, Cin, H, W = x_nchw.shape
    # 4 chained 1x1 stride-2 convs => only the stride-16 grid of pixels matters.
    xs = x_nchw[:, :, ::16, ::16]                          # (N, Cin, Ho, Wo)
    Ho, Wo = xs.shape[2], xs.shape[3]
    HW = Ho * Wo
    rows = jnp.transpose(xs, (0, 2, 3, 1)).reshape(N, HW, Cin)

    w1, t1, w2, t2, w3, t3, w4, b4 = folded_params
    C1, C2, C3, Cout = w2.shape[0], w3.shape[0], w4.shape[0], w4.shape[1]
    out_itemsize = jnp.dtype(out_dtype).itemsize

    # Tile over the per-image pixel axis; multiple of 128 so the transposed
    # output block stays lane-dense.  Clamp for tiny inputs.
    tile_hw = max(128, min(int(tile_hw), _round_up(HW, 128)))
    tile_hw = _round_up(tile_hw, 128)
    # Keep >= ~4 grid steps when possible (v7x has 2 TCs sharing the parallel
    # grid; fewer steps idles a core or collapses double-buffering).
    target_steps = 4
    if N * _cdiv(HW, tile_hw) < target_steps:
        hw_tiles_wanted = _cdiv(target_steps, max(N, 1))
        tile_hw = max(128, min(tile_hw, _round_up(_cdiv(HW, hw_tiles_wanted), 128)))

    HWp = _round_up(HW, tile_hw)
    # Zero-padded rows produce relu(shift)-derived garbage that is sliced off
    # with out[:, :, :HW]; never reduce over HW inside the kernel w/o masking.
    rows = jnp.pad(rows, ((0, 0), (0, HWp - HW), (0, 0)))
    n_hw = HWp // tile_hw

    row_spec = pl.BlockSpec((1, tile_hw, Cin), lambda n, t: (n, t, 0))
    out_spec = pl.BlockSpec((1, Cout, tile_hw), lambda n, t: (n, 0, t))

    def full_spec(a):
        # whole (tiny, ~170 KB total) parameter array resident in VMEM;
        # constant index_map => DMA'd once.
        return pl.BlockSpec(a.shape, lambda n, t: (0, 0))

    param_bytes = sum(int(np.prod(a.shape)) * a.dtype.itemsize
                      for a in folded_params)
    flops = 2 * N * HWp * (Cin * C1 + C1 * C2 + C2 * C3 + C3 * Cout)
    bytes_accessed = (N * HWp * Cin * 4 + N * HWp * Cout * out_itemsize
                      + param_bytes)

    # VMEM budget, counting tiled footprints: double-buffered input/output
    # blocks, live f32 intermediates (incl. transposed copy, 2x headroom),
    # double-buffered params, plus slack.  Capped below v7x's 64 MiB VMEM.
    in_vmem = 2 * _tiled_bytes((1, tile_hw, Cin), 4)
    out_vmem = 2 * _tiled_bytes((1, Cout, tile_hw), out_itemsize)
    inter_vmem = 2 * sum(_tiled_bytes((tile_hw, c), 4)
                         for c in (C1, C2, C3, Cout)) \
                 + 2 * _tiled_bytes((Cout, tile_hw), 4)
    param_vmem = 2 * sum(_tiled_bytes(a.shape, a.dtype.itemsize)
                         for a in folded_params)
    vmem_limit = int(in_vmem + out_vmem + inter_vmem + param_vmem + (4 << 20))
    vmem_limit = min(max(vmem_limit, 8 << 20), 48 << 20)

    out = pl.pallas_call(
        _encoder_kernel,
        out_shape=jax.ShapeDtypeStruct((N, Cout, HWp), out_dtype),
        grid_spec=pltpu.PrefetchScalarGridSpec(
            num_scalar_prefetch=0,
            grid=(N, n_hw),
            in_specs=[row_spec] + [full_spec(a) for a in folded_params],
            out_specs=out_spec,
        ),
        compiler_params=pltpu.CompilerParams(
            dimension_semantics=("parallel", "parallel"),
            vmem_limit_bytes=vmem_limit),
        cost_estimate=pl.CostEstimate(flops=int(flops), transcendentals=0,
                                      bytes_accessed=int(bytes_accessed)),
    )(rows, *folded_params)

    # Output is already in NCHW channel-major order; slicing is a no-op when
    # HW is tile-aligned, and the reshape matches PyTorch's x.view(B, -1).
    return out[:, :, :HW].reshape(N, Cout * HW)


# --------------------------- parameter handling ---------------------------- #
def init_params(key, image_channels=1, conv_channels=64):
    c0 = image_channels
    c1, c2, c3, c4 = (conv_channels // 2, conv_channels,
                      conv_channels * 2, conv_channels * 4)
    dims = [(c0, c1), (c1, c2), (c2, c3), (c3, c4)]
    keys = jax.random.split(key, 4 * 6)
    raw, ki = [], 0
    for li, (cin, cout) in enumerate(dims):
        bound = 1.0 / np.sqrt(cin)  # PyTorch Conv2d default init bound (k=1)
        w = jax.random.uniform(keys[ki], (cin, cout), jnp.float32, -bound, bound); ki += 1
        b = jax.random.uniform(keys[ki], (cout,), jnp.float32, -bound, bound); ki += 1
        if li < 3:
            gamma = jax.random.uniform(keys[ki], (cout,), jnp.float32, 0.5, 1.5); ki += 1
            beta = jax.random.uniform(keys[ki], (cout,), jnp.float32, -0.5, 0.5); ki += 1
            mean = jax.random.uniform(keys[ki], (cout,), jnp.float32, -0.5, 0.5); ki += 1
            var = jax.random.uniform(keys[ki], (cout,), jnp.float32, 0.5, 1.5); ki += 1
            raw.append(dict(w=w, b=b, gamma=gamma, beta=beta, mean=mean, var=var))
        else:
            ki += 4
            raw.append(dict(w=w, b=b))
    return raw


def fold_params(raw, *, use_bf16=False):
    """Fold conv bias + eval-mode BN into the weights and a per-channel shift.

    Returns (w1, t1, w2, t2, w3, t3, w4, b4).  BN scale is folded into the
    weight columns (w' = w * scale[None, :]); shift = beta + (b - mean) * scale.
    With use_bf16=True the matmul weights are stored in bf16 (recommended on
    ALL generations incl. v5e: f32 matmuls decompose into ~3x bf16 MXU passes);
    shifts/biases and the Cin==1 layer-1 scale stay f32, accumulation is f32.
    Note: folding the BN scale into bf16 weights rounds the scale to ~3
    decimal digits; keep use_bf16=False if that matters.
    """
    mm_dtype = jnp.bfloat16 if use_bf16 else jnp.float32
    folded = []
    for li, p in enumerate(raw):
        if li < 3:
            scale = p["gamma"] / jnp.sqrt(p["var"] + EPS)
            shift = p["beta"] + (p["b"] - p["mean"]) * scale
            w = p["w"] * scale[None, :]
            if li == 0 and p["w"].shape[0] == 1:
                # Cin == 1: this is the VPU broadcast scale -> keep f32.
                folded += [w.astype(jnp.float32), shift[None, :].astype(jnp.float32)]
            else:
                folded += [w.astype(mm_dtype), shift[None, :].astype(jnp.float32)]
        else:
            folded += [p["w"].astype(mm_dtype), p["b"][None, :].astype(jnp.float32)]
    return tuple(folded)


# --------------------------- pure-JAX reference ----------------------------- #
def reference_forward(x, raw):
    def conv1x1_s2(x, w, b):           # x: NCHW, w: (cin, cout)
        xs = x[:, :, ::2, ::2]
        return jnp.einsum("nchw,cd->ndhw", xs, w) + b[None, :, None, None]

    def bn_eval(x, p):
        s = (p["gamma"] / jnp.sqrt(p["var"] + EPS))[None, :, None, None]
        return (x - p["mean"][None, :, None, None]) * s + p["beta"][None, :, None, None]

    h = x
    for li in range(3):
        p = raw[li]
        h = conv1x1_s2(h, p["w"], p["b"])
        h = jnp.maximum(bn_eval(h, p), 0.0)
    p = raw[3]
    h = conv1x1_s2(h, p["w"], p["b"])
    return h.reshape(h.shape[0], -1)


# ----------------------------------- main ----------------------------------- #
if __name__ == "__main__":
    key = jax.random.PRNGKey(0)
    kx, kp, kx2, kx3 = jax.random.split(key, 4)

    raw = init_params(kp, image_channels=1, conv_channels=64)
    folded_f32 = fold_params(raw, use_bf16=False)

    # --- f32 path, tiny shape: (2,1,32,32) -> HW = 4 per image, out (2,1024) --
    x = jax.random.normal(kx, (2, 1, 32, 32), dtype=jnp.float32)
    out = jax.block_until_ready(conv_encoder_forward(x, folded_f32))
    ref = reference_forward(x, raw)
    assert out.shape == ref.shape, (out.shape, ref.shape)
    np.testing.assert_allclose(np.asarray(out), np.asarray(ref),
                               rtol=1e-4, atol=1e-4)

    # --- f32 path, HW = 36 with padding to 128: (3,1,96,96) ------------------
    x2 = jax.random.normal(kx2, (3, 1, 96, 96), dtype=jnp.float32)
    out2 = jax.block_until_ready(conv_encoder_forward(x2, folded_f32))
    ref2 = reference_forward(x2, raw)
    assert out2.shape == ref2.shape, (out2.shape, ref2.shape)
    np.testing.assert_allclose(np.asarray(out2), np.asarray(ref2),
                               rtol=1e-4, atol=1e-4)

    # --- multi hw-tile grid + padding: (1,1,192,192), HW = 144, tile_hw = 128 -
    x3 = jax.random.normal(kx3, (1, 1, 192, 192), dtype=jnp.float32)
    out3 = jax.block_until_ready(conv_encoder_forward(x3, folded_f32, tile_hw=128))
    ref3 = reference_forward(x3, raw)
    assert out3.shape == ref3.shape, (out3.shape, ref3.shape)
    np.testing.assert_allclose(np.asarray(out3), np.asarray(ref3),
                               rtol=1e-4, atol=1e-4)

    # --- bf16 output writeback (f32 accumulation), looser tolerance ----------
    out4 = jax.block_until_ready(
        conv_encoder_forward(x2, folded_f32, out_dtype=jnp.bfloat16))
    np.testing.assert_allclose(np.asarray(out4.astype(jnp.float32)),
                               np.asarray(ref2), rtol=2e-2, atol=2e-2)

    # --- bf16 MXU weights (f32 accumulation + f32 epilogue) -------------------
    folded_bf16 = fold_params(raw, use_bf16=True)
    out5 = jax.block_until_ready(conv_encoder_forward(x2, folded_bf16))
    np.testing.assert_allclose(np.asarray(out5), np.asarray(ref2),
                               rtol=5e-2, atol=5e-2)

    print("KERNEL_OK")
</pallas_src>

<mosaic_0001>
module attributes {stable_mosaic.version = 11 : i64} {
  func.func @_encoder_kernel(%arg0: i32, %arg1: i32, %arg2: memref<1x128x1xf32, #tpu.memory_space<vmem>>, %arg3: memref<1x32xf32, #tpu.memory_space<vmem>>, %arg4: memref<1x32xf32, #tpu.memory_space<vmem>>, %arg5: memref<32x64xf32, #tpu.memory_space<vmem>>, %arg6: memref<1x64xf32, #tpu.memory_space<vmem>>, %arg7: memref<64x128xf32, #tpu.memory_space<vmem>>, %arg8: memref<1x128xf32, #tpu.memory_space<vmem>>, %arg9: memref<128x256xf32, #tpu.memory_space<vmem>>, %arg10: memref<1x256xf32, #tpu.memory_space<vmem>>, %arg11: memref<1x256x128xf32, #tpu.memory_space<vmem>>) attributes {dimension_semantics = [#tpu.dimension_semantics<parallel>, #tpu.dimension_semantics<parallel>], iteration_bounds = array<i64: 2, 1>, scalar_prefetch = 0 : i64, scratch_operands = 0 : i64, tpu.core_type = #tpu.core_type<tc>, window_params = [{transform_indices = @transform_0, window_bounds = array<i64: 1, 128, 1>}, {pipeline_mode = #tpu.pipeline_mode<synchronous>, transform_indices = @transform_1, window_bounds = array<i64: 1, 32>}, {pipeline_mode = #tpu.pipeline_mode<synchronous>, transform_indices = @transform_2, window_bounds = array<i64: 1, 32>}, {pipeline_mode = #tpu.pipeline_mode<synchronous>, transform_indices = @transform_3, window_bounds = array<i64: 32, 64>}, {pipeline_mode = #tpu.pipeline_mode<synchronous>, transform_indices = @transform_4, window_bounds = array<i64: 1, 64>}, {pipeline_mode = #tpu.pipeline_mode<synchronous>, transform_indices = @transform_5, window_bounds = array<i64: 64, 128>}, {pipeline_mode = #tpu.pipeline_mode<synchronous>, transform_indices = @transform_6, window_bounds = array<i64: 1, 128>}, {pipeline_mode = #tpu.pipeline_mode<synchronous>, transform_indices = @transform_7, window_bounds = array<i64: 128, 256>}, {pipeline_mode = #tpu.pipeline_mode<synchronous>, transform_indices = @transform_8, window_bounds = array<i64: 1, 256>}, {transform_indices = @transform_9, window_bounds = array<i64: 1, 256, 128>}]} {
    %c0 = arith.constant 0 : index
    %c0_0 = arith.constant 0 : index
    %c0_1 = arith.constant 0 : index
    %0 = vector.load %arg2[%c0, %c0_0, %c0_1] : memref<1x128x1xf32, #tpu.memory_space<vmem>>, vector<1x128x1xf32>
    %1 = vector.shape_cast %0 : vector<1x128x1xf32> to vector<128x1xf32>
    %c0_2 = arith.constant 0 : index
    %c0_3 = arith.constant 0 : index
    %2 = vector.load %arg3[%c0_2, %c0_3] : memref<1x32xf32, #tpu.memory_space<vmem>>, vector<1x32xf32>
    %3 = vector.broadcast %1 : vector<128x1xf32> to vector<128x32xf32>
    %4 = vector.broadcast %2 : vector<1x32xf32> to vector<128x32xf32>
    %5 = arith.mulf %3, %4 : vector<128x32xf32>
    %c0_4 = arith.constant 0 : index
    %c0_5 = arith.constant 0 : index
    %6 = vector.load %arg4[%c0_4, %c0_5] : memref<1x32xf32, #tpu.memory_space<vmem>>, vector<1x32xf32>
    %7 = vector.broadcast %6 : vector<1x32xf32> to vector<128x32xf32>
    %8 = arith.addf %5, %7 : vector<128x32xf32>
    %cst = arith.constant 0.000000e+00 : f32
    %9 = vector.broadcast %cst : f32 to vector<128x32xf32>
    %10 = arith.maximumf %8, %9 : vector<128x32xf32>
    %c0_6 = arith.constant 0 : index
    %c0_7 = arith.constant 0 : index
    %11 = vector.load %arg5[%c0_6, %c0_7] : memref<32x64xf32, #tpu.memory_space<vmem>>, vector<32x64xf32>
    %cst_8 = arith.constant dense<0.000000e+00> : vector<128x64xf32>
    %12 = tpu.matmul %10, %11, %cst_8 {dimension_numbers = #tpu.dot_dimension_numbers<[1], [0], [0], [1], [0, 0, 1, 1], [], []>} : vector<128x32xf32>, vector<32x64xf32>, vector<128x64xf32> -> vector<128x64xf32>
    %c0_9 = arith.constant 0 : index
    %c0_10 = arith.constant 0 : index
    %13 = vector.load %arg6[%c0_9, %c0_10] : memref<1x64xf32, #tpu.memory_space<vmem>>, vector<1x64xf32>
    %14 = vector.broadcast %13 : vector<1x64xf32> to vector<128x64xf32>
    %15 = arith.addf %12, %14 : vector<128x64xf32>
    %cst_11 = arith.constant 0.000000e+00 : f32
    %16 = vector.broadcast %cst_11 : f32 to vector<128x64xf32>
    %17 = arith.maximumf %15, %16 : vector<128x64xf32>
    %c0_12 = arith.constant 0 : index
    %c0_13 = arith.constant 0 : index
    %18 = vector.load %arg7[%c0_12, %c0_13] : memref<64x128xf32, #tpu.memory_space<vmem>>, vector<64x128xf32>
    %cst_14 = arith.constant dense<0.000000e+00> : vector<128x128xf32>
    %19 = tpu.matmul %17, %18, %cst_14 {dimension_numbers = #tpu.dot_dimension_numbers<[1], [0], [0], [1], [0, 0, 1, 1], [], []>} : vector<128x64xf32>, vector<64x128xf32>, vector<128x128xf32> -> vector<128x128xf32>
    %c0_15 = arith.constant 0 : index
    %c0_16 = arith.constant 0 : index
    %20 = vector.load %arg8[%c0_15, %c0_16] : memref<1x128xf32, #tpu.memory_space<vmem>>, vector<1x128xf32>
    %21 = vector.broadcast %20 : vector<1x128xf32> to vector<128x128xf32>
    %22 = arith.addf %19, %21 : vector<128x128xf32>
    %cst_17 = arith.constant 0.000000e+00 : f32
    %23 = vector.broadcast %cst_17 : f32 to vector<128x128xf32>
    %24 = arith.maximumf %22, %23 : vector<128x128xf32>
    %c0_18 = arith.constant 0 : index
    %c0_19 = arith.constant 0 : index
    %25 = vector.load %arg9[%c0_18, %c0_19] : memref<128x256xf32, #tpu.memory_space<vmem>>, vector<128x256xf32>
    %cst_20 = arith.constant dense<0.000000e+00> : vector<128x256xf32>
    %26 = tpu.matmul %24, %25, %cst_20 {dimension_numbers = #tpu.dot_dimension_numbers<[1], [0], [0], [1], [0, 0, 1, 1], [], []>} : vector<128x128xf32>, vector<128x256xf32>, vector<128x256xf32> -> vector<128x256xf32>
    %c0_21 = arith.constant 0 : index
    %c0_22 = arith.constant 0 : index
    %27 = vector.load %arg10[%c0_21, %c0_22] : memref<1x256xf32, #tpu.memory_space<vmem>>, vector<1x256xf32>
    %28 = vector.broadcast %27 : vector<1x256xf32> to vector<128x256xf32>
    %29 = arith.addf %26, %28 : vector<128x256xf32>
    %30 = tpu.transpose %29, [1, 0] : vector<128x256xf32> -> vector<256x128xf32>
    %c0_23 = arith.constant 0 : index
    %c0_24 = arith.constant 0 : index
    %c0_25 = arith.constant 0 : index
    %31 = vector.load %arg11[%c0_23, %c0_24, %c0_25] : memref<1x256x128xf32, #tpu.memory_space<vmem>>, vector<1x256x128xf32>
    %32 = vector.shape_cast %31 : vector<1x256x128xf32> to vector<256x128xf32>
    %33 = vector.shape_cast %30 : vector<256x128xf32> to vector<1x256x128xf32>
    tpu.vector_store %arg11[%c0_23, %c0_24, %c0_25], %33 {strides = array<i32>} : memref<1x256x128xf32, #tpu.memory_space<vmem>>, vector<1x256x128xf32>,
    return
  }
  func.func @transform_0(%arg0: i32, %arg1: i32) -> (i32, i32, i32) {
    %c0_i32 = arith.constant 0 : i32
    %c0_i32_0 = arith.constant 0 : i32
    return %arg0, %arg1, %c0_i32 : i32, i32, i32
  }
  func.func @transform_1(%arg0: i32, %arg1: i32) -> (i32, i32) {
    %c0_i32 = arith.constant 0 : i32
    %c0_i32_0 = arith.constant 0 : i32
    %c0_i32_1 = arith.constant 0 : i32
    return %c0_i32, %c0_i32_0 : i32, i32
  }
  func.func @transform_2(%arg0: i32, %arg1: i32) -> (i32, i32) {
    %c0_i32 = arith.constant 0 : i32
    %c0_i32_0 = arith.constant 0 : i32
    %c0_i32_1 = arith.constant 0 : i32
    return %c0_i32, %c0_i32_0 : i32, i32
  }
  func.func @transform_3(%arg0: i32, %arg1: i32) -> (i32, i32) {
    %c0_i32 = arith.constant 0 : i32
    %c0_i32_0 = arith.constant 0 : i32
    %c0_i32_1 = arith.constant 0 : i32
    return %c0_i32, %c0_i32_0 : i32, i32
  }
  func.func @transform_4(%arg0: i32, %arg1: i32) -> (i32, i32) {
    %c0_i32 = arith.constant 0 : i32
    %c0_i32_0 = arith.constant 0 : i32
    %c0_i32_1 = arith.constant 0 : i32
    return %c0_i32, %c0_i32_0 : i32, i32
  }
  func.func @transform_5(%arg0: i32, %arg1: i32) -> (i32, i32) {
    %c0_i32 = arith.constant 0 : i32
    %c0_i32_0 = arith.constant 0 : i32
    %c0_i32_1 = arith.constant 0 : i32
    return %c0_i32, %c0_i32_0 : i32, i32
  }
  func.func @transform_6(%arg0: i32, %arg1: i32) -> (i32, i32) {
    %c0_i32 = arith.constant 0 : i32
    %c0_i32_0 = arith.constant 0 : i32
    %c0_i32_1 = arith.constant 0 : i32
    return %c0_i32, %c0_i32_0 : i32, i32
  }
  func.func @transform_7(%arg0: i32, %arg1: i32) -> (i32, i32) {
    %c0_i32 = arith.constant 0 : i32
    %c0_i32_0 = arith.constant 0 : i32
    %c0_i32_1 = arith.constant 0 : i32
    return %c0_i32, %c0_i32_0 : i32, i32
  }
  func.func @transform_8(%arg0: i32, %arg1: i32) -> (i32, i32) {
    %c0_i32 = arith.constant 0 : i32
    %c0_i32_0 = arith.constant 0 : i32
    %c0_i32_1 = arith.constant 0 : i32
    return %c0_i32, %c0_i32_0 : i32, i32
  }
  func.func @transform_9(%arg0: i32, %arg1: i32) -> (i32, i32, i32) {
    %c0_i32 = arith.constant 0 : i32
    %c0_i32_0 = arith.constant 0 : i32
    return %arg0, %c0_i32, %arg1 : i32, i32, i32
  }
}

</mosaic_0001>

<bundles_post_ra>
// kernel: tpu_custom_call.1
= control target key start
LH: loop header
LB: loop body
LE: loop exit
PB: predicated region body
PF: predicated region fallthrough
CT: control target
= control target key end

     0   :  { %14 = vsyncpa [#allocation3], 0  ;;  %s1974_s0 = inlined_call_operand.vmem [shape: f32[2,128,1], index: 0, kind: input, shape index: {}]   ;;  %s1975_s1 = inlined_call_operand.vmem [shape: f32[1,32], index: 1, kind: input, shape index: {}]   ;;  %s1976_s2 = inlined_call_operand.vmem [shape: f32[1,32], index: 2, kind: input, shape index: {}]   ;;  %s1977_s3 = inlined_call_operand.hbm [shape: f32[32,64], index: 3, kind: input, shape index: {}]   ;;  %s1978_s4 = inlined_call_operand.vmem [shape: f32[1,64], index: 4, kind: input, shape index: {}]   ;;  %s1979_s5 = inlined_call_operand.hbm [shape: f32[64,128], index: 5, kind: input, shape index: {}]   ;;  %s1980_s6 = inlined_call_operand.vmem [shape: f32[1,128], index: 6, kind: input, shape index: {}]   ;;  %s1981_s7 = inlined_call_operand.vmem [shape: f32[128,256], index: 7, kind: input, shape index: {}]   ;;  %s1982_s8 = inlined_call_operand.vmem [shape: f32[1,256], index: 8, kind: input, shape index: {}]   ;;  %s1983_s9 = inlined_call_operand.hbm [shape: f32[2,256,128], index: 9, kind: output, shape index: {}]  }
   0x1   :  { %15 = vsyncpa [#allocation6], 0 }
   0x2   :  { %16 = vsyncpa [#allocation4], 0 }
   0x3   :  { %18 = vsyncpa [#allocation4 + $0x1], 0  ;;  %s1568_s30 = smov 0   ;;  %s1570_s10 = smov 0  }
   0x4   :  { %s1572_s11 = smov 0   ;;  %s1574_s12 = smov 0  }
   0x5   :  { %s1576_s13 = smov 0   ;;  %s1578_s14 = smov 0  }
   0x6 LB: > { %1986 = sst [smem:[#allocation11_spill]] %s1505_s13  ;;  %s1208_s15 = sadd.s32 4294967295, %s1509_s14   ;;  %s1509_s14 = sphi %s1578_s14, %s24_s14   ;;  %s1505_s13 = sphi %s1576_s13, %s1993_s13   ;;  %s1501_s12 = sphi %s1574_s12, %s1992_s12   ;;  %s1497_s11 = sphi %s1572_s11, %s1996_s11   ;;  %s1493_s10 = sphi %s1570_s10, %s1995_s10   ;;  %s1489_s30 = sphi %s1568_s30, %s1994_s30  }
   0x7   : > { %s1209_s16 = sadd.s32 4294967294, %s1509_s14   ;;  %s36_s17 = sadd.s32 1, %s1505_s13 }
   0x8   : > { %s241_s18 = sadd.s32 1, %s1497_s11  ;;  %p38_p0 = scmp.ge.s32.totalorder %s36_s17, 2 }
   0x9   : > { %p251_p1 = scmp.ne.s32.totalorder %s1497_s11, %s1493_s10  ;;  %p252_p2 = scmp.eq.s32.totalorder %s1208_s15, 1 }
   0xa   : > { %p257_p3 = scmp.ne.s32.totalorder %s1493_s10, %s1489_s30  ;;  %s1998_s17 = smov (%p38_p0, %s36_s17), 0 }
   0xb   : > { %1987 = sst [smem:[#allocation12_spill]] %s1998_s17  ;;  %p1608_p4 = por %p252_p2, %p251_p1 }
   0xc   : > { %p258_p5 = scmp.eq.s32.totalorder %s1209_s16, 1  ;;  %s236_s20 = ssub.s32 %s1505_s13, %s1998_s17 }
   0xd   : > { %p1210_p6 = scmp.ge.s32.totalorder %s1509_s14, 1  ;;  %p239_p7 = scmp.eq.s32.totalorder %s236_s20, 0 }
   0xe   : > { %p1615_p8 = por %p258_p5, %p257_p3  ;;  %p265_p9 = scmp.lt.s32.totalorder %s1509_s14, 3 }
   0xf   : > { %s1621_s22 = scalar_select %p239_p7, %s1497_s11, %s241_s18  }
  0x10   : > { %p1623_p10 = pnand %p1210_p6, %p265_p9  ;;  %p1627_p11 = scmp.eq.s32.totalorder %s1208_s15, 0 }
  0x11   : > { %s282_s27 = sshll.u32 %s1977_s3, 4  ;;  %s1511_s28 = smov [#allocation2]   ;;  %s283_s27 = int_to_ptr.hbm [resolvable:$true] %s282_s27 }
  0x12   : > { %p1285_p12 = pneg %p1623_p10  ;;  %s284_s29 = sshll.u32 %s1511_s28, 4  ;;  %s285_s29 = int_to_ptr.vmem [resolvable:$true] %s284_s29 }
  0x13   : > { %s299_s15 = sshll.u32 %s1979_s5, 4  ;;  %s1512_s20 = smov 128   ;;  %s300_s15 = int_to_ptr.hbm [resolvable:$true] %s299_s15 }
  0x14   : > { %p1286_p13 = pnand %p1627_p11, %p1285_p12  ;;  %s1513_s17 = smov 8  }
  0x15   : > { %s1514_s13 = smov [#allocation5]   ;;  %339 = sbr.rel (%p1623_p10) target bundleno = 840 (0x348), region = 56 }
  0x16   : > { %1288 = dma.hbm_to_vmem [thread:$0]  (!%p1286_p13), %s283_s27, 512, %s285_s29, [#allocation3], %s1512_s20, %s1512_s20, %s1513_s17  }
  0x17   : > { %s301_s25 = sshll.u32 %s1514_s13, 4  ;;  %s302_s25 = int_to_ptr.vmem [resolvable:$true] %s301_s25 }
  0x18   : > { %1291 = dma.hbm_to_vmem [thread:$0]  (!%p1286_p13), %s300_s15, 1024, %s302_s25, [#allocation6], %s1512_s20, %s1512_s20, %s1513_s17  }
  0x1a   : > { %1476 = dma.done.wait (%p1627_p11), [#allocation3], 512  }
  0x1b   : > { %1478 = vsyncadd (%p1627_p11), [#allocation3], 4294966784 }
  0x1c   : > { %1480 = dma.done.wait (%p1627_p11), [#allocation6], 1024  }
  0x1d   : > { %1482 = vsyncadd (%p1627_p11), [#allocation6], 4294966272  ;;  %p386_p0 = scmp.lt.s32.totalorder %s1501_s12, 1  ;;  %v1515_v0 = vmov 0   ;;  %v550_v7 = vld [vmem:[#allocation2 + $0x18] sm:$0xff]  ;;  %v549_v18 = vld [vmem:[#allocation2 + $0x10] sm:$0xff] }
  0x1e   : > { %1357 = vset.pattern.permute.xlu1 %v1515_v0  ;;  %1356 = vset.pattern.permute.xlu0 %v1515_v0  ;;  %v548_v19 = vld [vmem:[#allocation2 + $0x8] sm:$0xff]  ;;  %v547_v20 = vld [vmem:[#allocation2] sm:$0xff]  ;;  %vm555_vm0 = vcmask 261120   ;;  %vm697_vm1 = vcmask 523264  }
  0x1f   : > { %s387_s13 = scalar_select %p386_p0, %s1501_s12, 1  ;;  %1358 = vset.pattern.permute.xlu2 %v1515_v0  ;;  %616 = vmatpush.msra.mxu0 %v550_v7  ;;  %v1359_v23 = vld [vmem:[%s1975_s1] ss:$0 sm:$0xff] }
  0x20   : > { %v1360_v25 = vld [vmem:[%s1976_s2] ss:$0 sm:$0xff] }
  0x21   : > { %s1257_s17 = sshll.u32 %s387_s13, 7  ;;  %617 = vmatpush.msra.mxu0 %v549_v18  ;;  %v692_v18 = vld [vmem:[#allocation5 + $0x38] sm:$0xff] }
  0x22   : > { %s1656_s27 = scalar_lea.vmem %s1974_s0, %s1257_s17  ;;  %754 = vmatpush.msra.mxu1 %v692_v18  ;;  %v848_v18 = vld [vmem:[%s1981_s7 + $0xa8] sm:$0xff]  ;;  %s382_s17 = sand.u32 1, %s1493_s10  }
  0x23   : > { %v397_v1 = vld [vmem:[%s1656_s27 + $0x10] sm:$0xff]  ;;  %v395_v2 = vld [vmem:[%s1656_s27] sm:$0xff]  ;;  %v398_v4 = vld [vmem:[%s1656_s27 + $0x18] sm:$0xff]  ;;  %618 = vmatpush.msra.mxu0 %v548_v19  ;;  %s1217_s23 = sshll.u32 %s382_s17, 8  ;;  %s1092_s15 = scalar_lea.sflag [#allocation4], %s382_s17 }
  0x24   : > { %424 = vperm.xlu1 %1357, %v397_v1   ;;  %414 = vperm.xlu0 %1356, %v395_v2   ;;  %v399_v3 = vld [vmem:[%s1656_s27 + $0x20] sm:$0xff]  ;;  %v396_v5 = vld [vmem:[%s1656_s27 + $0x8] sm:$0xff]  ;;  %v402_v8 = vld [vmem:[%s1656_s27 + $0x38] sm:$0xff]  ;;  %s1901_s26 = scalar_lea.vmem [#allocation7], %s1217_s23  ;;  %s1443_s23 = scalar_lea.hbm %s1983_s9, 512 }
  0x25   : > { %434 = vperm.xlu2 %1358, %v399_v3   ;;  %v400_v6 = vld [vmem:[%s1656_s27 + $0x28] sm:$0xff]  ;;  %v401_v9 = vld [vmem:[%s1656_s27 + $0x30] sm:$0xff]  ;;  %v403_v10 = vld [vmem:[%s1656_s27 + $0x40] sm:$0xff]  ;;  %619 = vmatpush.msra.mxu0 %v547_v20  ;;  %s1105_s16 = sshll.u32 %s1901_s26, 4  ;;  %s1106_s16 = int_to_ptr.vmem [resolvable:$true] %s1105_s16 }
  0x26   : > { %v405_v11 = vld [vmem:[%s1656_s27 + $0x50] sm:$0xff]  ;;  %v404_v12 = vld [vmem:[%s1656_s27 + $0x48] sm:$0xff]  ;;  %v406_v13 = vld [vmem:[%s1656_s27 + $0x58] sm:$0xff] }
  0x27   : > { %v408_v14 = vld [vmem:[%s1656_s27 + $0x68] sm:$0xff]  ;;  %v407_v15 = vld [vmem:[%s1656_s27 + $0x60] sm:$0xff]  ;;  %v409_v16 = vld [vmem:[%s1656_s27 + $0x70] sm:$0xff] }
  0x28   : > { %v410_v17 = vld [vmem:[%s1656_s27 + $0x78] sm:$0xff]  ;;  %v691_v19 = vld [vmem:[#allocation5 + $0x30] sm:$0xff]  ;;  %v690_v20 = vld [vmem:[#allocation5 + $0x28] sm:$0xff]  ;;  %s1258_s27 = sshll.u32 %s1501_s12, 8 }
  0x29   : > { %755 = vmatpush.msra.mxu1 %v691_v19  ;;  %s1104_s29 = scalar_lea.hbm %s1983_s9, %s1258_s27 }
  0x2a   : > { %s1107_s18 = sshll.u32 %s1104_s29, 4  ;;  %s1108_s18 = int_to_ptr.hbm [resolvable:$true] %s1107_s18 }
  0x2b   : > { %756 = vmatpush.msra.mxu1 %v690_v20  ;;  %v846_v20 = vld [vmem:[%s1981_s7 + $0x98] sm:$0xff]  ;;  %s1437_s20 = sshra.s32 %s1108_s18, 4  ;;  %s1438_s20 = int_to_ptr.hbm [resolvable:$true] %s1437_s20 }
  0x2c   : > { %429 = vperm.xlu1 %1357, %v398_v4   ;;  %419 = vperm.xlu0 %1356, %v396_v5   ;;  %s1439_s25 = scalar_lea.hbm %s1438_s20, 256  ;;  %p1444_p5 = scmp.lt.s32.totalorder %s1438_s20, %s1983_s9 }
  0x2d   : > { %439 = vperm.xlu2 %1358, %v400_v6   ;;  %p1440_p1 = scmp.ne.s32.totalorder %s1438_s20, %s1439_s25  ;;  %p1445_p6 = scmp.lt.s32.totalorder %s1443_s23, %s1439_s25 }
  0x2f   : > { %p1441_p2 = pnand %p1440_p1, %p1608_p4  ;;  %p1446_p7 = por %p1445_p6, %p1444_p5 }
  0x31   : > { %p1442_p3 = pneg %p1441_p2 }
  0x33   : > { %p1447_p9 = pnand %p1446_p7, %p1442_p3 }
  0x34   : > { %449 = vperm.xlu1 %1357, %v402_v8   ;;  %444 = vperm.xlu0 %1356, %v401_v9  }
  0x35   : > { %454 = vperm.xlu2 %1358, %v403_v10  }
  0x3c   : > { %464 = vperm.xlu1 %1357, %v405_v11   ;;  %459 = vperm.xlu0 %1356, %v404_v12  }
  0x3d   : > { %469 = vperm.xlu2 %1358, %v406_v13  }
  0x44   : > { %479 = vperm.xlu1 %1357, %v408_v14   ;;  %474 = vperm.xlu0 %1356, %v407_v15  }
  0x45   : > { %484 = vperm.xlu2 %1358, %v409_v16  }
  0x4c   : > { %489 = vperm.xlu0 %1356, %v410_v17  }
  0x7f   : > { %v435_v21 = vpop.permute.xlu2 %434 }
  0x80   : > { %v499_v55 = vmul.f32 %v1359_v23, %v435_v21 }
  0x82   : > { %v519_v59 = vadd.f32 %v1360_v25, %v499_v55 }
  0x84   : > { %v535_v0 = vmax.f32 %v519_v59, 0.0 }
  0x87   : > { %v440_v22 = vpop.permute.xlu2 %439 }
  0x88   : > { %v500_v3 = vmul.f32 %v1359_v23, %v440_v22  ;;  %v689_v22 = vld [vmem:[#allocation5 + $0x20] sm:$0xff] }
  0x89   : > { %757 = vmatpush.msra.mxu1 %v689_v22  ;;  %v844_v22 = vld [vmem:[%s1981_s7 + $0x88] sm:$0xff] }
  0x8a   : > { %v520_v5 = vadd.f32 %v1360_v25, %v500_v3 }
  0x8c   : > { %v536_v8 = vmax.f32 %v520_v5, 0.0 }
  0x8f   : > { %v455_v24 = vpop.permute.xlu2 %454 }
  0x90   : > { %v503_v26 = vmul.f32 %v1359_v23, %v455_v24  ;;  %v687_v24 = vld [vmem:[#allocation5 + $0x10] sm:$0xff] }
  0x92   : > { %v1680_v27 = vadd.f32 %v1360_v25, %v503_v26  ;;  %v686_v26 = vld [vmem:[#allocation5 + $0x8] sm:$0xff] }
  0x94   : > { %v539_v15 = vmax.f32 %v1680_v27, 0.0  ;;  %v685_v27 = vld [vmem:[#allocation5] sm:$0xff] }
  0x96   : > { %v425_v28 = vpop.permute.xlu1 %424  ;;  %v415_v29 = vpop.permute.xlu0 %414 }
  0x97   : > { %v495_v30 = vmul.f32 %v1359_v23, %v415_v29  ;;  %v470_v31 = vpop.permute.xlu2 %469  ;;  %v497_v40 = vmul.f32 %v1359_v23, %v425_v28  ;;  %v857_v29 = vld [vmem:[%s1981_s7 + $0xf0] sm:$0xff] }
  0x98   : > { %v506_v33 = vmul.f32 %v1359_v23, %v470_v31  ;;  %865 = vmatpush.msrb.mxu0 %v857_v29  ;;  %1259 = vmatpush.msra.mxu2 %v857_v29  ;;  %v855_v31 = vld [vmem:[%s1981_s7 + $0xe0] sm:$0xff]  ;;  %v829_v29 = vld [vmem:[%s1981_s7 + $0x10] sm:$0xff] }
  0x99   : > { %v515_v32 = vadd.f32 %v1360_v25, %v495_v30  ;;  %v517_v45 = vadd.f32 %v1360_v25, %v497_v40 }
  0x9a   : > { %v1682_v35 = vadd.f32 %v1360_v25, %v506_v33  ;;  %866 = vmatpush.msrb.mxu0 %v855_v31  ;;  %1260 = vmatpush.msra.mxu2 %v855_v31  ;;  %v1714_v33 = vld [vmem:[%s1978_s4] ss:$0 sm:$0xff]  ;;  %v834_v31 = vld [vmem:[%s1981_s7 + $0x38] sm:$0xff] }
  0x9b   : > { %v531_v34 = vmax.f32 %v515_v32, 0.0  ;;  %v533_v48 = vmax.f32 %v517_v45, 0.0 }
  0x9c   : > { %v542_v21 = vmax.f32 %v1682_v35, 0.0 }
  0x9d   : > { %1220 = vmatmul.msk.f32.vlgmr.msra.gmra.mxu0 %vm555_vm0, %v531_v34  ;;  %v853_v34 = vld [vmem:[%s1981_s7 + $0xd0] sm:$0xff] }
  0x9e   : > { %v430_v36 = vpop.permute.xlu1 %429  ;;  %v420_v37 = vpop.permute.xlu0 %419  ;;  %867 = vmatpush.msrb.mxu0 %v853_v34  ;;  %1261 = vmatpush.msra.mxu2 %v853_v34 }
  0x9f   : > { %v496_v38 = vmul.f32 %v1359_v23, %v420_v37  ;;  %v485_v39 = vpop.permute.xlu2 %484  ;;  %v498_v49 = vmul.f32 %v1359_v23, %v430_v36 }
  0xa0   : > { %v509_v42 = vmul.f32 %v1359_v23, %v485_v39 }
  0xa1   : > { %v516_v41 = vadd.f32 %v1360_v25, %v496_v38  ;;  %v518_v52 = vadd.f32 %v1360_v25, %v498_v49  ;;  %v851_v38 = vld [vmem:[%s1981_s7 + $0xc0] sm:$0xff] }
  0xa2   : > { %v1685_v44 = vadd.f32 %v1360_v25, %v509_v42  ;;  %868 = vmatpush.msrb.mxu0 %v851_v38  ;;  %1262 = vmatpush.msra.mxu2 %v851_v38  ;;  %v849_v42 = vld [vmem:[%s1981_s7 + $0xb0] sm:$0xff]  ;;  %v827_v38 = vld [vmem:[%s1981_s7] sm:$0xff] }
  0xa3   : > { %v532_v43 = vmax.f32 %v516_v41, 0.0  ;;  %v534_v58 = vmax.f32 %v518_v52, 0.0 }
  0xa4   : > { %v545_v30 = vmax.f32 %v1685_v44, 0.0  ;;  %869 = vmatpush.msrb.mxu0 %v849_v42  ;;  %1263 = vmatpush.msra.mxu2 %v849_v42 }
  0xa5   : > { %1221 = vmatmul.msk.f32.gmra.mxu0 %vm555_vm0, %v532_v43 }
  0xa6   : > { %v450_v46 = vpop.permute.xlu1 %449  ;;  %v445_v47 = vpop.permute.xlu0 %444 }
  0xa7   : > { %v501_v9 = vmul.f32 %v1359_v23, %v445_v47  ;;  %v502_v11 = vmul.f32 %v1359_v23, %v450_v46  ;;  %v847_v46 = vld [vmem:[%s1981_s7 + $0xa0] sm:$0xff] }
  0xa8   : > { %870 = vmatpush.msrb.mxu0 %v847_v46  ;;  %1264 = vmatpush.msra.mxu2 %v847_v46 }
  0xa9   : > { %v521_v10 = vadd.f32 %v1360_v25, %v501_v9  ;;  %v522_v13 = vadd.f32 %v1360_v25, %v502_v11 }
  0xab   : > { %v537_v12 = vmax.f32 %v521_v10, 0.0  ;;  %v538_v14 = vmax.f32 %v522_v13, 0.0  ;;  %v856_v10 = vld [vmem:[%s1981_s7 + $0xe8] sm:$0xff]  ;;  %v833_v13 = vld [vmem:[%s1981_s7 + $0x30] sm:$0xff] }
  0xad   : > { %1222 = vmatmul.msk.f32.gmra.mxu0 %vm555_vm0, %v533_v48 }
  0xae   : > { %v465_v50 = vpop.permute.xlu1 %464  ;;  %v460_v51 = vpop.permute.xlu0 %459 }
  0xaf   : > { %v505_v53 = vmul.f32 %v1359_v23, %v465_v50  ;;  %v504_v54 = vmul.f32 %v1359_v23, %v460_v51  ;;  %v845_v50 = vld [vmem:[%s1981_s7 + $0x90] sm:$0xff] }
  0xb0   : > { %871 = vmatpush.msrb.mxu0 %v845_v50  ;;  %1265 = vmatpush.msra.mxu2 %v845_v50 }
  0xb1   : > { %v525_v56 = vadd.f32 %v1360_v25, %v505_v53  ;;  %v524_v57 = vadd.f32 %v1360_v25, %v504_v54  ;;  %v843_v54 = vld [vmem:[%s1981_s7 + $0x80] sm:$0xff] }
  0xb2   : > { %872 = vmatpush.msrb.mxu0 %v843_v54  ;;  %1266 = vmatpush.msra.mxu2 %v843_v54 }
  0xb3   : > { %v540_v16 = vmax.f32 %v524_v57, 0.0  ;;  %v541_v17 = vmax.f32 %v525_v56, 0.0 }
  0xb5   : > { %1223 = vmatmul.msk.f32.gmra.mxu0 %vm555_vm0, %v534_v58  ;;  %v841_v58 = vld [vmem:[%s1981_s7 + $0x70] sm:$0xff] }
  0xb6   : > { %v480_v60 = vpop.permute.xlu1 %479  ;;  %v475_v61 = vpop.permute.xlu0 %474  ;;  %873 = vmatpush.msrb.mxu0 %v841_v58  ;;  %1267 = vmatpush.msra.mxu2 %v841_v58 }
  0xb7   : > { %v508_v62 = vmul.f32 %v1359_v23, %v480_v60  ;;  %v507_v63 = vmul.f32 %v1359_v23, %v475_v61 }
  0xb9   : > { %v528_v1 = vadd.f32 %v1360_v25, %v508_v62  ;;  %v527_v2 = vadd.f32 %v1360_v25, %v507_v63  ;;  %v839_v62 = vld [vmem:[%s1981_s7 + $0x60] sm:$0xff] }
  0xba   : > { %874 = vmatpush.msrb.mxu0 %v839_v62  ;;  %1268 = vmatpush.msra.mxu2 %v839_v62 }
  0xbb   : > { %v544_v28 = vmax.f32 %v528_v1, 0.0 }
  0xbd   : > { %1224 = vmatmul.msk.f32.gmra.mxu0 %vm555_vm0, %v535_v0 }
  0xbe   : > { %v490_v4 = vpop.permute.xlu0 %489 }
  0xbf   : > { %v510_v6 = vmul.f32 %v1359_v23, %v490_v4  ;;  %v688_v23 = vld [vmem:[#allocation5 + $0x18] sm:$0xff] }
  0xc0   : > { %758 = vmatpush.msra.mxu1 %v688_v23  ;;  %v842_v23 = vld [vmem:[%s1981_s7 + $0x78] sm:$0xff] }
  0xc1   : > { %v530_v7 = vadd.f32 %v1360_v25, %v510_v6  ;;  %v543_v25 = vmax.f32 %v527_v2, 0.0  ;;  %v837_v2 = vld [vmem:[%s1981_s7 + $0x50] sm:$0xff]  ;;  %v835_v6 = vld [vmem:[%s1981_s7 + $0x40] sm:$0xff] }
  0xc2   : > { %759 = vmatpush.msra.mxu1 %v687_v24  ;;  %875 = vmatpush.msrb.mxu0 %v837_v2 }
  0xc3   : > { %v546_v32 = vmax.f32 %v530_v7, 0.0  ;;  %1269 = vmatpush.msra.mxu2 %v837_v2  ;;  %v858_v7 = vld [vmem:[%s1981_s7 + $0xf8] sm:$0xff] }
  0xc4   : > { %760 = vmatpush.msra.mxu1 %v686_v26  ;;  %876 = vmatpush.msrb.mxu0 %v835_v6  ;;  %v840_v26 = vld [vmem:[%s1981_s7 + $0x68] sm:$0xff] }
  0xc5   : > { %1225 = vmatmul.msk.f32.gmra.mxu0 %vm555_vm0, %v536_v8  ;;  %1270 = vmatpush.msra.mxu2 %v835_v6 }
  0xc6   : > { %761 = vmatpush.msra.mxu1 %v685_v27  ;;  %930 = vmatpush.msra.mxu3 %v858_v7 }
  0xc7   : > { %877 = vmatpush.msrb.mxu0 %v833_v13  ;;  %1271 = vmatpush.msra.mxu2 %v833_v13 }
  0xc8   : > { %931 = vmatpush.msra.mxu3 %v856_v10 }
  0xcd   : > { %1226 = vmatmul.msk.f32.gmra.mxu0 %vm555_vm0, %v537_v12  ;;  %v854_v12 = vld [vmem:[%s1981_s7 + $0xd8] sm:$0xff] }
  0xce   : > { %932 = vmatpush.msra.mxu3 %v854_v12 }
  0xd5   : > { %1227 = vmatmul.msk.f32.gmra.mxu0 %vm555_vm0, %v538_v14  ;;  %v852_v14 = vld [vmem:[%s1981_s7 + $0xc8] sm:$0xff] }
  0xd6   : > { %933 = vmatpush.msra.mxu3 %v852_v14 }
  0xdd   : > { %1228 = vmatmul.msk.f32.gmra.mxu0 %vm555_vm0, %v539_v15  ;;  %v850_v15 = vld [vmem:[%s1981_s7 + $0xb8] sm:$0xff] }
  0xde   : > { %934 = vmatpush.msra.mxu3 %v850_v15 }
  0xe0   : > { %935 = vmatpush.msra.mxu3 %v848_v18 }
  0xe2   : > { %936 = vmatpush.msra.mxu3 %v846_v20 }
  0xe4   : > { %937 = vmatpush.msra.mxu3 %v844_v22 }
  0xe5   : > { %1229 = vmatmul.msk.f32.gmra.mxu0 %vm555_vm0, %v540_v16 }
  0xe6   : > { %938 = vmatpush.msra.mxu3 %v842_v23 }
  0xe8   : > { %939 = vmatpush.msra.mxu3 %v840_v26 }
  0xed   : > { %1230 = vmatmul.msk.f32.gmra.mxu0 %vm555_vm0, %v541_v17 }
  0xf5   : > { %1231 = vmatmul.msk.f32.gmra.mxu0 %vm555_vm0, %v542_v21  ;;  %v831_v21 = vld [vmem:[%s1981_s7 + $0x20] sm:$0xff] }
  0xf6   : > { %878 = vmatpush.msrb.mxu0 %v831_v21  ;;  %1272 = vmatpush.msra.mxu2 %v831_v21 }
  0xf8   : > { %879 = vmatpush.msrb.mxu0 %v829_v29  ;;  %1273 = vmatpush.msra.mxu2 %v829_v29 }
  0xfa   : > { %880 = vmatpush.msrb.mxu0 %v827_v38  ;;  %1274 = vmatpush.msra.mxu2 %v827_v38 }
  0xfd   : > { %1232 = vmatmul.msk.f32.gmra.mxu0 %vm555_vm0, %v543_v25 }
 0x105   : > { %1233 = vmatmul.msk.f32.gmra.mxu0 %vm555_vm0, %v544_v28  ;;  %v838_v28 = vld [vmem:[%s1981_s7 + $0x58] sm:$0xff] }
 0x106   : > { %940 = vmatpush.msra.mxu3 %v838_v28 }
 0x10d   : > { %1234 = vmatmul.msk.f32.gmra.mxu0 %vm555_vm0, %v545_v30  ;;  %v836_v30 = vld [vmem:[%s1981_s7 + $0x48] sm:$0xff] }
 0x10e   : > { %941 = vmatpush.msra.mxu3 %v836_v30 }
 0x110   : > { %942 = vmatpush.msra.mxu3 %v834_v31 }
 0x115   : > { %1235 = vmatmul.msk.f32.gmra.mxu0 %vm555_vm0, %v546_v32 }
 0x11a   : > { %v621_v35 = vpop.f32.mrf.mxu0 }
 0x11b   : > { %v622_v36 = vadd.f32 %v1714_v33, %v621_v35  ;;  %v832_v35 = vld [vmem:[%s1981_s7 + $0x28] sm:$0xff] }
 0x11c   : > { %943 = vmatpush.msra.mxu3 %v832_v35 }
 0x11d   : > { %v669_v37 = vmax.f32 %v622_v36, 0.0 }
 0x11f   : > { %1236 = vmatmul.msk.f32.vlgmr.msra.gmra.mxu1 %vm697_vm1, %v669_v37  ;;  %v830_v37 = vld [vmem:[%s1981_s7 + $0x18] sm:$0xff] }
 0x120   : > { %944 = vmatpush.msra.mxu3 %v830_v37 }
 0x122   : > { %v624_v39 = vpop.f32.mrf.mxu0 }
 0x123   : > { %v625_v40 = vadd.f32 %v1714_v33, %v624_v39  ;;  %v828_v39 = vld [vmem:[%s1981_s7 + $0x8] sm:$0xff] }
 0x124   : > { %945 = vmatpush.msra.mxu3 %v828_v39 }
 0x125   : > { %v670_v41 = vmax.f32 %v625_v40, 0.0 }
 0x127   : > { %1237 = vmatmul.msk.f32.gmra.mxu1 %vm697_vm1, %v670_v41 }
 0x12a   : > { %v627_v43 = vpop.f32.mrf.mxu0 }
 0x12b   : > { %v628_v44 = vadd.f32 %v1714_v33, %v627_v43 }
 0x12d   : > { %v671_v45 = vmax.f32 %v628_v44, 0.0 }
 0x12f   : > { %1238 = vmatmul.msk.f32.gmra.mxu1 %vm697_vm1, %v671_v45 }
 0x132   : > { %v630_v47 = vpop.f32.mrf.mxu0 }
 0x133   : > { %v631_v48 = vadd.f32 %v1714_v33, %v630_v47 }
 0x135   : > { %v672_v49 = vmax.f32 %v631_v48, 0.0 }
 0x137   : > { %1239 = vmatmul.msk.f32.gmra.mxu1 %vm697_vm1, %v672_v49  ;;  %v1841_v49 = vld [vmem:[%s1980_s6] ss:$0 sm:$0xff] }
 0x13a   : > { %v633_v51 = vpop.f32.mrf.mxu0 }
 0x13b   : > { %v634_v52 = vadd.f32 %v1714_v33, %v633_v51 }
 0x13d   : > { %v673_v53 = vmax.f32 %v634_v52, 0.0 }
 0x13f   : > { %1240 = vmatmul.msk.f32.gmra.mxu1 %vm697_vm1, %v673_v53 }
 0x142   : > { %v636_v55 = vpop.f32.mrf.mxu0 }
 0x143   : > { %v637_v56 = vadd.f32 %v1714_v33, %v636_v55 }
 0x145   : > { %v674_v57 = vmax.f32 %v637_v56, 0.0 }
 0x147   : > { %1241 = vmatmul.msk.f32.gmra.mxu1 %vm697_vm1, %v674_v57 }
 0x14a   : > { %v639_v59 = vpop.f32.mrf.mxu0 }
 0x14b   : > { %v640_v60 = vadd.f32 %v1714_v33, %v639_v59 }
 0x14d   : > { %v675_v61 = vmax.f32 %v640_v60, 0.0 }
 0x14f   : > { %1242 = vmatmul.msk.f32.gmra.mxu1 %vm697_vm1, %v675_v61 }
 0x152   : > { %v642_v63 = vpop.f32.mrf.mxu0 }
 0x153   : > { %v643_v0 = vadd.f32 %v1714_v33, %v642_v63 }
 0x155   : > { %v676_v1 = vmax.f32 %v643_v0, 0.0 }
 0x157   : > { %1243 = vmatmul.msk.f32.gmra.mxu1 %vm697_vm1, %v676_v1 }
 0x15a   : > { %v645_v3 = vpop.f32.mrf.mxu0 }
 0x15b   : > { %v646_v4 = vadd.f32 %v1714_v33, %v645_v3 }
 0x15d   : > { %v677_v5 = vmax.f32 %v646_v4, 0.0 }
 0x15f   : > { %1244 = vmatmul.msk.f32.gmra.mxu1 %vm697_vm1, %v677_v5 }
 0x162   : > { %v648_v8 = vpop.f32.mrf.mxu0 }
 0x163   : > { %v649_v9 = vadd.f32 %v1714_v33, %v648_v8 }
 0x165   : > { %v678_v11 = vmax.f32 %v649_v9, 0.0 }
 0x167   : > { %1245 = vmatmul.msk.f32.gmra.mxu1 %vm697_vm1, %v678_v11 }
 0x16a   : > { %v651_v16 = vpop.f32.mrf.mxu0 }
 0x16b   : > { %v652_v17 = vadd.f32 %v1714_v33, %v651_v16 }
 0x16d   : > { %v679_v19 = vmax.f32 %v652_v17, 0.0 }
 0x16f   : > { %1246 = vmatmul.msk.f32.gmra.mxu1 %vm697_vm1, %v679_v19 }
 0x172   : > { %v654_v24 = vpop.f32.mrf.mxu0 }
 0x173   : > { %v655_v25 = vadd.f32 %v1714_v33, %v654_v24 }
 0x175   : > { %v680_v27 = vmax.f32 %v655_v25, 0.0 }
 0x177   : > { %1247 = vmatmul.msk.f32.gmra.mxu1 %vm697_vm1, %v680_v27 }
 0x17a   : > { %v657_v32 = vpop.f32.mrf.mxu0 }
 0x17b   : > { %v658_v34 = vadd.f32 %v1714_v33, %v657_v32 }
 0x17d   : > { %v681_v36 = vmax.f32 %v658_v34, 0.0  ;;  %v859_v34 = vld [vmem:[%s1982_s8] sm:$0x3] }
 0x17e   : > { %v1862_v35 = vperm.slane %v859_v34, 0  ;;  %v1865_v38 = vperm.slane %v859_v34, 1 }
 0x17f   : > { %1248 = vmatmul.msk.f32.gmra.mxu1 %vm697_vm1, %v681_v36 }
 0x182   : > { %v660_v40 = vpop.f32.mrf.mxu0 }
 0x183   : > { %v661_v41 = vadd.f32 %v1714_v33, %v660_v40 }
 0x185   : > { %v682_v42 = vmax.f32 %v661_v41, 0.0 }
 0x187   : > { %1249 = vmatmul.msk.f32.gmra.mxu1 %vm697_vm1, %v682_v42 }
 0x18a   : > { %v663_v43 = vpop.f32.mrf.mxu0 }
 0x18b   : > { %v664_v44 = vadd.f32 %v1714_v33, %v663_v43 }
 0x18d   : > { %v683_v45 = vmax.f32 %v664_v44, 0.0 }
 0x18f   : > { %1250 = vmatmul.msk.f32.gmra.mxu1 %vm697_vm1, %v683_v45 }
 0x192   : > { %v666_v46 = vpop.f32.mrf.mxu0 }
 0x193   : > { %v667_v47 = vadd.f32 %v1714_v33, %v666_v46 }
 0x195   : > { %v684_v48 = vmax.f32 %v667_v47, 0.0 }
 0x197   : > { %1251 = vmatmul.msk.f32.gmra.mxu1 %vm697_vm1, %v684_v48 }
 0x19c   : > { %v763_v50 = vpop.f32.mrf.mxu1 }
 0x19d   : > { %v764_v51 = vadd.f32 %v1841_v49, %v763_v50 }
 0x19f   : > { %v811_v52 = vmax.f32 %v764_v51, 0.0 }
 0x1a1   : > { %881 = vmatmul.f32.vlgmr.msrb.gmra.mxu0 %v811_v52  ;;  %946 = vmatmul.f32.vlgmr.msra.gmra.mxu3 %v811_v52 }
 0x1a4   : > { %v766_v53 = vpop.f32.mrf.mxu1 }
 0x1a5   : > { %v767_v54 = vadd.f32 %v1841_v49, %v766_v53 }
 0x1a7   : > { %v812_v55 = vmax.f32 %v767_v54, 0.0 }
 0x1a9   : > { %884 = vmatmul.f32.vlgmr.msra.gmra.mxu2 %v812_v55  ;;  %949 = vmatmul.f32.gmra.mxu3 %v812_v55 }
 0x1ac   : > { %v769_v33 = vpop.f32.mrf.mxu1 }
 0x1ad   : > { %v770_v56 = vadd.f32 %v1841_v49, %v769_v33 }
 0x1af   : > { %v813_v57 = vmax.f32 %v770_v56, 0.0 }
 0x1b1   : > { %887 = vmatmul.f32.gmra.mxu2 %v813_v57  ;;  %952 = vmatmul.f32.gmra.mxu3 %v813_v57 }
 0x1b4   : > { %v772_v58 = vpop.f32.mrf.mxu1 }
 0x1b5   : > { %v773_v59 = vadd.f32 %v1841_v49, %v772_v58 }
 0x1b7   : > { %v814_v60 = vmax.f32 %v773_v59, 0.0 }
 0x1b9   : > { %890 = vmatmul.f32.gmra.mxu2 %v814_v60  ;;  %955 = vmatmul.f32.gmra.mxu3 %v814_v60 }
 0x1bc   : > { %v775_v61 = vpop.f32.mrf.mxu1 }
 0x1bd   : > { %v776_v62 = vadd.f32 %v1841_v49, %v775_v61 }
 0x1bf   : > { %v815_v63 = vmax.f32 %v776_v62, 0.0 }
 0x1c1   : > { %893 = vmatmul.f32.gmra.mxu2 %v815_v63  ;;  %958 = vmatmul.f32.gmra.mxu3 %v815_v63 }
 0x1c4   : > { %v778_v0 = vpop.f32.mrf.mxu1 }
 0x1c5   : > { %v779_v1 = vadd.f32 %v1841_v49, %v778_v0 }
 0x1c7   : > { %v816_v2 = vmax.f32 %v779_v1, 0.0 }
 0x1c9   : > { %896 = vmatmul.f32.gmra.mxu2 %v816_v2  ;;  %961 = vmatmul.f32.gmra.mxu3 %v816_v2 }
 0x1cc   : > { %v781_v3 = vpop.f32.mrf.mxu1 }
 0x1cd   : > { %v782_v4 = vadd.f32 %v1841_v49, %v781_v3 }
 0x1cf   : > { %v817_v5 = vmax.f32 %v782_v4, 0.0 }
 0x1d1   : > { %899 = vmatmul.f32.gmra.mxu2 %v817_v5  ;;  %964 = vmatmul.f32.gmra.mxu3 %v817_v5 }
 0x1d4   : > { %v784_v6 = vpop.f32.mrf.mxu1 }
 0x1d5   : > { %v785_v7 = vadd.f32 %v1841_v49, %v784_v6 }
 0x1d7   : > { %v818_v8 = vmax.f32 %v785_v7, 0.0 }
 0x1d9   : > { %902 = vmatmul.f32.gmra.mxu2 %v818_v8  ;;  %967 = vmatmul.f32.gmra.mxu3 %v818_v8 }
 0x1dc   : > { %v787_v9 = vpop.f32.mrf.mxu1 }
 0x1dd   : > { %v788_v10 = vadd.f32 %v1841_v49, %v787_v9 }
 0x1df   : > { %v819_v11 = vmax.f32 %v788_v10, 0.0 }
 0x1e1   : > { %905 = vmatmul.f32.gmra.mxu2 %v819_v11  ;;  %970 = vmatmul.f32.gmra.mxu3 %v819_v11 }
 0x1e4   : > { %v790_v12 = vpop.f32.mrf.mxu1 }
 0x1e5   : > { %v791_v13 = vadd.f32 %v1841_v49, %v790_v12 }
 0x1e7   : > { %v820_v14 = vmax.f32 %v791_v13, 0.0 }
 0x1e9   : > { %908 = vmatmul.f32.gmra.mxu2 %v820_v14  ;;  %973 = vmatmul.f32.gmra.mxu3 %v820_v14 }
 0x1ec   : > { %v793_v15 = vpop.f32.mrf.mxu1 }
 0x1ed   : > { %v794_v16 = vadd.f32 %v1841_v49, %v793_v15 }
 0x1ef   : > { %v821_v17 = vmax.f32 %v794_v16, 0.0 }
 0x1f1   : > { %911 = vmatmul.f32.gmra.mxu2 %v821_v17  ;;  %976 = vmatmul.f32.gmra.mxu3 %v821_v17 }
 0x1f4   : > { %v796_v18 = vpop.f32.mrf.mxu1 }
 0x1f5   : > { %v797_v19 = vadd.f32 %v1841_v49, %v796_v18 }
 0x1f7   : > { %v822_v20 = vmax.f32 %v797_v19, 0.0 }
 0x1f9   : > { %914 = vmatmul.f32.gmra.mxu2 %v822_v20  ;;  %979 = vmatmul.f32.gmra.mxu3 %v822_v20 }
 0x1fc   : > { %v799_v21 = vpop.f32.mrf.mxu1 }
 0x1fd   : > { %v800_v22 = vadd.f32 %v1841_v49, %v799_v21 }
 0x1ff   : > { %v823_v23 = vmax.f32 %v800_v22, 0.0 }
 0x201   : > { %917 = vmatmul.f32.gmra.mxu2 %v823_v23  ;;  %982 = vmatmul.f32.gmra.mxu3 %v823_v23 }
 0x204   : > { %v802_v24 = vpop.f32.mrf.mxu1 }
 0x205   : > { %v803_v25 = vadd.f32 %v1841_v49, %v802_v24 }
 0x207   : > { %v824_v26 = vmax.f32 %v803_v25, 0.0 }
 0x209   : > { %920 = vmatmul.f32.gmra.mxu2 %v824_v26  ;;  %985 = vmatmul.f32.gmra.mxu3 %v824_v26 }
 0x20c   : > { %v805_v27 = vpop.f32.mrf.mxu1 }
 0x20d   : > { %v806_v28 = vadd.f32 %v1841_v49, %v805_v27 }
 0x20f   : > { %v825_v29 = vmax.f32 %v806_v28, 0.0 }
 0x211   : > { %923 = vmatmul.f32.gmra.mxu2 %v825_v29  ;;  %988 = vmatmul.f32.gmra.mxu3 %v825_v29 }
 0x214   : > { %v808_v30 = vpop.f32.mrf.mxu1 }
 0x215   : > { %v809_v31 = vadd.f32 %v1841_v49, %v808_v30 }
 0x217   : > { %v826_v32 = vmax.f32 %v809_v31, 0.0 }
 0x219   : > { %926 = vmatmul.f32.gmra.mxu2 %v826_v32  ;;  %991 = vmatmul.f32.gmra.mxu3 %v826_v32 }
 0x21e   : > { %v882_v36 = vpop.f32.mrf.mxu0 }
 0x21f   : > { %v883_v37 = vadd.f32 %v882_v36, %v1862_v35 }
 0x221   : > { %995 = vxpose.xlu1.b32.start [1/16] %v883_v37, 128 }
 0x224   : > { %v947_v39 = vpop.f32.mrf.mxu3 }
 0x225   : > { %v948_v40 = vadd.f32 %v947_v39, %v1865_v38 }
 0x227   : > { %1027 = vxpose.xlu2.b32.start [1/16] %v948_v40, 128 }
 0x22c   : > { %v885_v41 = vpop.f32.mrf.mxu2  ;;  %v950_v42 = vpop.f32.mrf.mxu3 }
 0x22d   : > { %v886_v43 = vadd.f32 %v885_v41, %v1862_v35  ;;  %v951_v44 = vadd.f32 %v950_v42, %v1865_v38 }
 0x22f   : > { %1028 = vxpose.xlu2.b32.cont [2/16] %v951_v44, 128  ;;  %996 = vxpose.xlu1.b32.cont [2/16] %v886_v43, 128 }
 0x234   : > { %v888_v45 = vpop.f32.mrf.mxu2  ;;  %v953_v46 = vpop.f32.mrf.mxu3 }
 0x235   : > { %v889_v47 = vadd.f32 %v888_v45, %v1862_v35  ;;  %v954_v48 = vadd.f32 %v953_v46, %v1865_v38 }
 0x237   : > { %1029 = vxpose.xlu2.b32.cont [3/16] %v954_v48, 128  ;;  %997 = vxpose.xlu1.b32.cont [3/16] %v889_v47, 128 }
 0x23c   : > { %v891_v49 = vpop.f32.mrf.mxu2  ;;  %v956_v50 = vpop.f32.mrf.mxu3 }
 0x23d   : > { %v892_v51 = vadd.f32 %v891_v49, %v1862_v35  ;;  %v957_v52 = vadd.f32 %v956_v50, %v1865_v38 }
 0x23f   : > { %1030 = vxpose.xlu2.b32.cont [4/16] %v957_v52, 128  ;;  %998 = vxpose.xlu1.b32.cont [4/16] %v892_v51, 128 }
 0x244   : > { %v894_v53 = vpop.f32.mrf.mxu2  ;;  %v959_v54 = vpop.f32.mrf.mxu3 }
 0x245   : > { %v895_v55 = vadd.f32 %v894_v53, %v1862_v35  ;;  %v960_v33 = vadd.f32 %v959_v54, %v1865_v38 }
 0x247   : > { %1031 = vxpose.xlu2.b32.cont [5/16] %v960_v33, 128  ;;  %999 = vxpose.xlu1.b32.cont [5/16] %v895_v55, 128 }
 0x24c   : > { %v897_v56 = vpop.f32.mrf.mxu2  ;;  %v962_v57 = vpop.f32.mrf.mxu3 }
 0x24d   : > { %v898_v58 = vadd.f32 %v897_v56, %v1862_v35  ;;  %v963_v59 = vadd.f32 %v962_v57, %v1865_v38 }
 0x24f   : > { %1032 = vxpose.xlu2.b32.cont [6/16] %v963_v59, 128  ;;  %1000 = vxpose.xlu1.b32.cont [6/16] %v898_v58, 128 }
 0x254   : > { %v900_v60 = vpop.f32.mrf.mxu2  ;;  %v965_v61 = vpop.f32.mrf.mxu3 }
 0x255   : > { %v901_v62 = vadd.f32 %v900_v60, %v1862_v35  ;;  %v966_v63 = vadd.f32 %v965_v61, %v1865_v38 }
 0x257   : > { %1033 = vxpose.xlu2.b32.cont [7/16] %v966_v63, 128  ;;  %1001 = vxpose.xlu1.b32.cont [7/16] %v901_v62, 128 }
 0x25c   : > { %v903_v0 = vpop.f32.mrf.mxu2  ;;  %v968_v1 = vpop.f32.mrf.mxu3 }
 0x25d   : > { %v904_v2 = vadd.f32 %v903_v0, %v1862_v35  ;;  %v969_v3 = vadd.f32 %v968_v1, %v1865_v38 }
 0x25f   : > { %1034 = vxpose.xlu2.b32.cont [8/16] %v969_v3, 128  ;;  %1002 = vxpose.xlu1.b32.cont [8/16] %v904_v2, 128 }
 0x264   : > { %v906_v4 = vpop.f32.mrf.mxu2  ;;  %v971_v5 = vpop.f32.mrf.mxu3 }
 0x265   : > { %v907_v6 = vadd.f32 %v906_v4, %v1862_v35  ;;  %v972_v7 = vadd.f32 %v971_v5, %v1865_v38 }
 0x267   : > { %1035 = vxpose.xlu2.b32.cont [9/16] %v972_v7, 128  ;;  %1003 = vxpose.xlu1.b32.cont [9/16] %v907_v6, 128 }
 0x26c   : > { %v909_v8 = vpop.f32.mrf.mxu2  ;;  %v974_v9 = vpop.f32.mrf.mxu3 }
 0x26d   : > { %v910_v10 = vadd.f32 %v909_v8, %v1862_v35  ;;  %v975_v11 = vadd.f32 %v974_v9, %v1865_v38 }
 0x26f   : > { %1036 = vxpose.xlu2.b32.cont [10/16] %v975_v11, 128  ;;  %1004 = vxpose.xlu1.b32.cont [10/16] %v910_v10, 128 }
 0x274   : > { %v912_v12 = vpop.f32.mrf.mxu2  ;;  %v977_v13 = vpop.f32.mrf.mxu3 }
 0x275   : > { %v913_v14 = vadd.f32 %v912_v12, %v1862_v35  ;;  %v978_v15 = vadd.f32 %v977_v13, %v1865_v38 }
 0x277   : > { %1037 = vxpose.xlu2.b32.cont [11/16] %v978_v15, 128  ;;  %1005 = vxpose.xlu1.b32.cont [11/16] %v913_v14, 128 }
 0x27c   : > { %v915_v16 = vpop.f32.mrf.mxu2  ;;  %v980_v17 = vpop.f32.mrf.mxu3 }
 0x27d   : > { %v916_v18 = vadd.f32 %v915_v16, %v1862_v35  ;;  %v981_v19 = vadd.f32 %v980_v17, %v1865_v38 }
 0x27f   : > { %1038 = vxpose.xlu2.b32.cont [12/16] %v981_v19, 128  ;;  %1006 = vxpose.xlu1.b32.cont [12/16] %v916_v18, 128 }
 0x284   : > { %v918_v20 = vpop.f32.mrf.mxu2  ;;  %v983_v21 = vpop.f32.mrf.mxu3 }
 0x285   : > { %v919_v22 = vadd.f32 %v918_v20, %v1862_v35  ;;  %v984_v23 = vadd.f32 %v983_v21, %v1865_v38 }
 0x287   : > { %1039 = vxpose.xlu2.b32.cont [13/16] %v984_v23, 128  ;;  %1007 = vxpose.xlu1.b32.cont [13/16] %v919_v22, 128 }
 0x28c   : > { %v921_v24 = vpop.f32.mrf.mxu2  ;;  %v986_v25 = vpop.f32.mrf.mxu3 }
 0x28d   : > { %v922_v26 = vadd.f32 %v921_v24, %v1862_v35  ;;  %v987_v27 = vadd.f32 %v986_v25, %v1865_v38 }
 0x28f   : > { %1040 = vxpose.xlu2.b32.cont [14/16] %v987_v27, 128  ;;  %1008 = vxpose.xlu1.b32.cont [14/16] %v922_v26, 128 }
 0x294   : > { %v924_v28 = vpop.f32.mrf.mxu2  ;;  %v989_v29 = vpop.f32.mrf.mxu3 }
 0x295   : > { %v925_v30 = vadd.f32 %v924_v28, %v1862_v35  ;;  %v990_v31 = vadd.f32 %v989_v29, %v1865_v38 }
 0x297   : > { %1041 = vxpose.xlu2.b32.cont [15/16] %v990_v31, 128  ;;  %1009 = vxpose.xlu1.b32.cont [15/16] %v925_v30, 128 }
 0x29c   : > { %v927_v32 = vpop.f32.mrf.mxu2  ;;  %v992_v34 = vpop.f32.mrf.mxu3 }
 0x29d   : > { %v928_v36 = vadd.f32 %v927_v32, %v1862_v35  ;;  %v993_v37 = vadd.f32 %v992_v34, %v1865_v38 }
 0x29f   : > { %1042 = vxpose.xlu2.b32.end [16/16] %v993_v37, 128  ;;  %1010 = vxpose.xlu1.b32.end [16/16] %v928_v36, 128 }
 0x2c0   : > { %v1043_v39 = vpop.trf.xlu2 }
 0x2c1   : > { %1075 = vst [vmem:[%s1901_s26 + $0x80] sm:$0xff] %v1043_v39 }
 0x2c8   : > { %v1044_v35 = vpop.trf.xlu2 }
 0x2c9   : > { %1076 = vst [vmem:[%s1901_s26 + $0x88] sm:$0xff] %v1044_v35 }
 0x2cb   : > { %v1011_v38 = vpop.trf.xlu1 }
 0x2cc   : > { %1059 = vst [vmem:[%s1901_s26] sm:$0xff] %v1011_v38 }
 0x2d0   : > { %v1045_v40 = vpop.trf.xlu2 }
 0x2d1   : > { %1077 = vst [vmem:[%s1901_s26 + $0x90] sm:$0xff] %v1045_v40 }
 0x2d3   : > { %v1012_v41 = vpop.trf.xlu1 }
 0x2d4   : > { %1060 = vst [vmem:[%s1901_s26 + $0x8] sm:$0xff] %v1012_v41 }
 0x2d8   : > { %v1046_v42 = vpop.trf.xlu2 }
 0x2d9   : > { %1078 = vst [vmem:[%s1901_s26 + $0x98] sm:$0xff] %v1046_v42 }
 0x2db   : > { %v1013_v43 = vpop.trf.xlu1 }
 0x2dc   : > { %1061 = vst [vmem:[%s1901_s26 + $0x10] sm:$0xff] %v1013_v43 }
 0x2e0   : > { %v1047_v44 = vpop.trf.xlu2 }
 0x2e1   : > { %1079 = vst [vmem:[%s1901_s26 + $0xa0] sm:$0xff] %v1047_v44 }
 0x2e3   : > { %v1014_v45 = vpop.trf.xlu1 }
 0x2e4   : > { %1062 = vst [vmem:[%s1901_s26 + $0x18] sm:$0xff] %v1014_v45 }
 0x2e8   : > { %v1048_v46 = vpop.trf.xlu2 }
 0x2e9   : > { %1080 = vst [vmem:[%s1901_s26 + $0xa8] sm:$0xff] %v1048_v46 }
 0x2eb   : > { %v1015_v47 = vpop.trf.xlu1 }
 0x2ec   : > { %1063 = vst [vmem:[%s1901_s26 + $0x20] sm:$0xff] %v1015_v47 }
 0x2f0   : > { %v1049_v48 = vpop.trf.xlu2 }
 0x2f1   : > { %1081 = vst [vmem:[%s1901_s26 + $0xb0] sm:$0xff] %v1049_v48 }
 0x2f3   : > { %v1016_v49 = vpop.trf.xlu1 }
 0x2f4   : > { %1064 = vst [vmem:[%s1901_s26 + $0x28] sm:$0xff] %v1016_v49 }
 0x2f8   : > { %v1050_v50 = vpop.trf.xlu2 }
 0x2f9   : > { %1082 = vst [vmem:[%s1901_s26 + $0xb8] sm:$0xff] %v1050_v50 }
 0x2fb   : > { %v1017_v51 = vpop.trf.xlu1 }
 0x2fc   : > { %1065 = vst [vmem:[%s1901_s26 + $0x30] sm:$0xff] %v1017_v51 }
 0x300   : > { %v1051_v52 = vpop.trf.xlu2 }
 0x301   : > { %1083 = vst [vmem:[%s1901_s26 + $0xc0] sm:$0xff] %v1051_v52 }
 0x303   : > { %v1018_v53 = vpop.trf.xlu1 }
 0x304   : > { %1066 = vst [vmem:[%s1901_s26 + $0x38] sm:$0xff] %v1018_v53 }
 0x308   : > { %v1052_v54 = vpop.trf.xlu2 }
 0x309   : > { %1084 = vst [vmem:[%s1901_s26 + $0xc8] sm:$0xff] %v1052_v54 }
 0x30b   : > { %v1019_v55 = vpop.trf.xlu1 }
 0x30c   : > { %1067 = vst [vmem:[%s1901_s26 + $0x40] sm:$0xff] %v1019_v55 }
 0x310   : > { %v1053_v33 = vpop.trf.xlu2 }
 0x311   : > { %1085 = vst [vmem:[%s1901_s26 + $0xd0] sm:$0xff] %v1053_v33 }
 0x313   : > { %v1020_v56 = vpop.trf.xlu1 }
 0x314   : > { %1068 = vst [vmem:[%s1901_s26 + $0x48] sm:$0xff] %v1020_v56 }
 0x318   : > { %v1054_v57 = vpop.trf.xlu2 }
 0x319   : > { %1086 = vst [vmem:[%s1901_s26 + $0xd8] sm:$0xff] %v1054_v57 }
 0x31b   : > { %v1021_v58 = vpop.trf.xlu1 }
 0x31c   : > { %1069 = vst [vmem:[%s1901_s26 + $0x50] sm:$0xff] %v1021_v58 }
 0x320   : > { %v1055_v59 = vpop.trf.xlu2 }
 0x321   : > { %1087 = vst [vmem:[%s1901_s26 + $0xe0] sm:$0xff] %v1055_v59 }
 0x323   : > { %v1022_v60 = vpop.trf.xlu1 }
 0x324   : > { %1070 = vst [vmem:[%s1901_s26 + $0x58] sm:$0xff] %v1022_v60 }
 0x328   : > { %v1056_v61 = vpop.trf.xlu2 }
 0x329   : > { %1088 = vst [vmem:[%s1901_s26 + $0xe8] sm:$0xff] %v1056_v61 }
 0x32b   : > { %v1023_v62 = vpop.trf.xlu1 }
 0x32c   : > { %1071 = vst [vmem:[%s1901_s26 + $0x60] sm:$0xff] %v1023_v62 }
 0x330   : > { %v1057_v63 = vpop.trf.xlu2 }
 0x331   : > { %1089 = vst [vmem:[%s1901_s26 + $0xf0] sm:$0xff] %v1057_v63 }
 0x333   : > { %v1024_v0 = vpop.trf.xlu1 }
 0x334   : > { %1072 = vst [vmem:[%s1901_s26 + $0x68] sm:$0xff] %v1024_v0 }
 0x338   : > { %v1058_v1 = vpop.trf.xlu2 }
 0x339   : > { %1090 = vst [vmem:[%s1901_s26 + $0xf8] sm:$0xff] %v1058_v1 }
 0x33b   : > { %v1025_v2 = vpop.trf.xlu1 }
 0x33c   : > { %1073 = vst [vmem:[%s1901_s26 + $0x70] sm:$0xff] %v1025_v2 }
 0x343   : > { %v1026_v3 = vpop.trf.xlu1 }
 0x344   : > { %1074 = vst [vmem:[%s1901_s26 + $0x78] sm:$0xff] %v1026_v3 }
 0x345   : > { %1450 = shalt.err (!%p1447_p9)
}
 0x346   : > { %s1516_s17 = smov 128   ;;  %s1517_s26 = smov 8  }
 0x347   : > { %1283 = dma.vmem_to_hbm [thread:$0]  (%p1608_p4), %s1106_s16, 4096, %s1108_s18, %s1092_s15, %s1516_s17, %s1516_s17, %s1517_s26  }
 0x348 PF: > { %p1300_p10 = scmp.ge.s32.totalorder %s1509_s14, 2  ;;  %s1122_s28 = sand.u32 1, %s1489_s30  }
 0x349   : > { %s1123_s29 = scalar_lea.sflag [#allocation4], %s1122_s28 }
 0x34a   : > { %p1293_p11 = pnand %p1300_p10, %p1615_p8 }
 0x34c   : > { %p1294_p12 = pneg %p1293_p11 }
 0x34e   : > { %1484 = dma.done.wait (%p1294_p12), %s1123_s29, 4096  }
 0x34f   : > { %1486 = vsyncadd (%p1294_p12), %s1123_s29, 4294963200  ;;  %s24_s14 = sadd.s32 1, %s1509_s14   ;;  %s1992_s12 = sld [smem:[#allocation11_spill]] }
 0x350   : > { %p21_p13 = scmp.ge.s32.totalorder %s24_s14, 4   ;;  %s1993_s13 = sld [smem:[#allocation12_spill]] }
 0x351   : > { %s1994_s30 = smov %s1493_s10  ;;  %s1995_s10 = smov %s1497_s11 }
 0x352   : > { %s1996_s11 = smov %s1621_s22  ;;  %23 = sbr.rel (!%p21_p13) target bundleno = 6 (0x6), region = 100 }
 0x357   :  { %1129 = vsyncpa [#allocation3], 1 }
 0x358   :  { %1131 = vsyncpa [#allocation3 + $0x1], 1 }
 0x359   :  { %1132 = vsyncpa [#allocation6], 1 }
 0x35a   :  { %1133 = vsyncpa [#allocation4], 1 }
 0x35b   :  { %1135 = vsyncpa [#allocation4 + $0x1], 1 }

</bundles_post_ra>
